<compile_context>
chip_gen: v5e
topology: v5e:2x2
jax: 0.10.0
libtpu: 0.0.40
codegen_flags: <defaults>
</compile_context>

<pallas_src>
import functools

import jax
import jax.numpy as jnp
from jax.experimental import pallas as pl
from jax.experimental.pallas import tpu as pltpu


def _round_up(x, m):
    return (x + m - 1) // m * m


def _linear_kernel(x_ref, w_ref, b_ref, o_ref, *, cast_x_to_bf16):
    """One (tm, N_pad) output tile: dot against the VMEM-resident W + bias."""
    x = x_ref[...]
    if cast_x_to_bf16:
        # VPU cast of the current tile only; hidden under the next tile's DMA.
        x = x.astype(jnp.bfloat16)
    acc = jnp.dot(x, w_ref[...], preferred_element_type=jnp.float32)
    o_ref[...] = (acc + b_ref[...]).astype(o_ref.dtype)


def _vmem_budget_bytes():
    """Generation-aware VMEM ceiling (v7x: 64 MiB physical; v5e/v6e: 128 MiB)."""
    try:
        cap = pltpu.get_tpu_info().vmem_capacity_bytes
    except Exception:
        cap = 64 * 1024 * 1024  # conservative (v7x-sized) fallback
    return max(32 * 1024 * 1024, min(int(cap * 3 // 4), 96 * 1024 * 1024))


def linear_pred(seq, weight, bias, *, tm=None, use_bf16_mxu=None):
    """PyTorch nn.Linear forward: seq @ weight.T + bias (weight: [out, in])."""
    orig_shape = seq.shape
    k = orig_shape[-1]
    x = seq.reshape(-1, k)  # no dtype cast, no padded copy of the big operand
    m = x.shape[0]
    n = weight.shape[0]
    n_pad = _round_up(n, 128)  # lane-dense output stores

    if use_bf16_mxu is None:
        # bf16 operands / f32 accumulation pays off once K is large enough to
        # be MXU-relevant; small classification heads stay exact-f32.
        use_bf16_mxu = k >= 256 and x.dtype in (jnp.float32, jnp.bfloat16)
    cast_x_to_bf16 = bool(use_bf16_mxu) and x.dtype == jnp.float32

    # W: fold the [N, K] -> [K, N_pad] transpose into the (tiny) padding pass.
    w_dtype = jnp.bfloat16 if use_bf16_mxu else jnp.float32
    w_p = (
        jnp.zeros((k, n_pad), w_dtype)
        .at[:, :n]
        .set(jnp.transpose(weight).astype(w_dtype))
    )
    b_p = (
        jnp.zeros((1, n_pad), jnp.float32)
        .at[:, :n]
        .set(bias.astype(jnp.float32).reshape(1, n))
    )

    out_dtype = x.dtype if x.dtype in (jnp.float32, jnp.bfloat16) else jnp.float32
    x_bytes = x.dtype.itemsize
    out_bytes = jnp.dtype(out_dtype).itemsize
    base = 16 if x_bytes == 2 else 8  # bf16 packs 2 rows / sublane

    budget = _vmem_budget_bytes()
    resident_bytes = w_p.size * w_p.dtype.itemsize + b_p.size * b_p.dtype.itemsize

    if tm is None:
        tm = 1024 if (use_bf16_mxu or k <= 512) else 512
    # Keep at least two M tiles when there is enough work (v7x: 2 TensorCores).
    if m > 2 * base:
        tm = min(tm, _round_up(pl.cdiv(m, 2), base))
    if m <= tm:
        tm = m  # single tile; block dim == full array dim is always legal
    else:
        tm = _round_up(min(tm, m), base)

    def _vmem_need(t):
        # resident W/bias + double-buffered x tile + double-buffered out tile
        return resident_bytes + 2 * t * k * x_bytes + 2 * t * n_pad * out_bytes

    while tm > base and _vmem_need(tm) > budget:
        tm = max(base, _round_up(tm // 2, base))

    grid = (pl.cdiv(m, tm),)
    kernel = functools.partial(_linear_kernel, cast_x_to_bf16=cast_x_to_bf16)

    out_p = pl.pallas_call(
        kernel,
        out_shape=jax.ShapeDtypeStruct((m, n_pad), out_dtype),
        grid_spec=pltpu.PrefetchScalarGridSpec(
            num_scalar_prefetch=0,
            grid=grid,
            in_specs=[
                pl.BlockSpec((tm, k), lambda i: (i, 0)),       # streamed x tiles
                pl.BlockSpec((k, n_pad), lambda i: (0, 0)),    # VMEM-resident W
                pl.BlockSpec((1, n_pad), lambda i: (0, 0)),    # VMEM-resident bias
            ],
            out_specs=pl.BlockSpec((tm, n_pad), lambda i: (i, 0)),
        ),
        compiler_params=pltpu.CompilerParams(
            dimension_semantics=("parallel",),
            vmem_limit_bytes=int(budget),
        ),
    )(x, w_p, b_p)

    # Slice back to nb_classes for module-exact semantics.  (Consumers that can
    # accept the lane-dense [*, N_pad] slab may skip this copy.)
    out = out_p[:, :n]
    return out.reshape(orig_shape[:-1] + (n,))


# ---------------------------------------------------------------------------
# Host-side parameter init mirroring the module's __init__ (xavier_uniform_ W,
# zero bias).  Plain JAX — parameter initialization is not a kernel.
# ---------------------------------------------------------------------------
def init_linear_pred_params(key, emb_dim, nb_classes):
    bound = (6.0 / (emb_dim + nb_classes)) ** 0.5
    weight = jax.random.uniform(
        key, (nb_classes, emb_dim), jnp.float32, -bound, bound
    )
    bias = jnp.zeros((nb_classes,), jnp.float32)
    return weight, bias


# ---------------------------------------------------------------------------
if __name__ == "__main__":
    key = jax.random.PRNGKey(0)
    k_seq, k_w, k_seq2 = jax.random.split(key, 3)

    batch = 8
    emb_dim = 32
    nb_classes = 16

    seq = jax.random.normal(k_seq, (batch, emb_dim), jnp.float32)
    weight, bias = init_linear_pred_params(k_w, emb_dim, nb_classes)

    out = jax.block_until_ready(linear_pred(seq, weight, bias))
    ref = seq @ weight.T + bias
    assert out.shape == ref.shape, (out.shape, ref.shape)
    assert jnp.allclose(out, ref, rtol=1e-5, atol=1e-5)

    # Multi-tile + ragged-M path (exercises streamed x tiles / boundary mask).
    seq2 = jax.random.normal(k_seq2, (300, emb_dim), jnp.float32)
    out2 = jax.block_until_ready(linear_pred(seq2, weight, bias, tm=152))
    ref2 = seq2 @ weight.T + bias
    assert out2.shape == ref2.shape, (out2.shape, ref2.shape)
    assert jnp.allclose(out2, ref2, rtol=1e-5, atol=1e-5)

    # bf16-operand / f32-accumulate MXU path (in-kernel x cast, pre-cast W).
    out_bf16 = jax.block_until_ready(
        linear_pred(seq, weight, bias, use_bf16_mxu=True)
    )
    assert jnp.allclose(out_bf16, ref, rtol=2e-2, atol=2e-2)

    print("KERNEL_OK")
</pallas_src>

<mosaic_0001>
module attributes {stable_mosaic.version = 11 : i64} {
  func.func @_linear_kernel(%arg0: i32, %arg1: memref<8x32xf32, #tpu.memory_space<vmem>>, %arg2: memref<32x128xf32, #tpu.memory_space<vmem>>, %arg3: memref<1x128xf32, #tpu.memory_space<vmem>>, %arg4: memref<8x128xf32, #tpu.memory_space<vmem>>) attributes {dimension_semantics = [#tpu.dimension_semantics<parallel>], iteration_bounds = array<i64: 1>, scalar_prefetch = 0 : i64, scratch_operands = 0 : i64, tpu.core_type = #tpu.core_type<tc>, window_params = [{transform_indices = @transform_0, window_bounds = array<i64: 8, 32>}, {pipeline_mode = #tpu.pipeline_mode<synchronous>, transform_indices = @transform_1, window_bounds = array<i64: 32, 128>}, {pipeline_mode = #tpu.pipeline_mode<synchronous>, transform_indices = @transform_2, window_bounds = array<i64: 1, 128>}, {transform_indices = @transform_3, window_bounds = array<i64: 8, 128>}]} {
    %c0 = arith.constant 0 : index
    %c0_0 = arith.constant 0 : index
    %0 = vector.load %arg1[%c0, %c0_0] : memref<8x32xf32, #tpu.memory_space<vmem>>, vector<8x32xf32>
    %c0_1 = arith.constant 0 : index
    %c0_2 = arith.constant 0 : index
    %1 = vector.load %arg2[%c0_1, %c0_2] : memref<32x128xf32, #tpu.memory_space<vmem>>, vector<32x128xf32>
    %cst = arith.constant dense<0.000000e+00> : vector<8x128xf32>
    %2 = tpu.matmul %0, %1, %cst {dimension_numbers = #tpu.dot_dimension_numbers<[1], [0], [0], [1], [0, 0, 1, 1], [], []>} : vector<8x32xf32>, vector<32x128xf32>, vector<8x128xf32> -> vector<8x128xf32>
    %c0_3 = arith.constant 0 : index
    %c0_4 = arith.constant 0 : index
    %3 = vector.load %arg3[%c0_3, %c0_4] : memref<1x128xf32, #tpu.memory_space<vmem>>, vector<1x128xf32>
    %4 = vector.broadcast %3 : vector<1x128xf32> to vector<8x128xf32>
    %5 = arith.addf %2, %4 : vector<8x128xf32>
    %c0_5 = arith.constant 0 : index
    %c0_6 = arith.constant 0 : index
    %6 = vector.load %arg4[%c0_5, %c0_6] : memref<8x128xf32, #tpu.memory_space<vmem>>, vector<8x128xf32>
    tpu.vector_store %arg4[%c0_5, %c0_6], %5 {strides = array<i32>} : memref<8x128xf32, #tpu.memory_space<vmem>>, vector<8x128xf32>,
    return
  }
  func.func @transform_0(%arg0: i32) -> (i32, i32) {
    %c0_i32 = arith.constant 0 : i32
    %c0_i32_0 = arith.constant 0 : i32
    return %arg0, %c0_i32 : i32, i32
  }
  func.func @transform_1(%arg0: i32) -> (i32, i32) {
    %c0_i32 = arith.constant 0 : i32
    %c0_i32_0 = arith.constant 0 : i32
    %c0_i32_1 = arith.constant 0 : i32
    return %c0_i32, %c0_i32_0 : i32, i32
  }
  func.func @transform_2(%arg0: i32) -> (i32, i32) {
    %c0_i32 = arith.constant 0 : i32
    %c0_i32_0 = arith.constant 0 : i32
    %c0_i32_1 = arith.constant 0 : i32
    return %c0_i32, %c0_i32_0 : i32, i32
  }
  func.func @transform_3(%arg0: i32) -> (i32, i32) {
    %c0_i32 = arith.constant 0 : i32
    %c0_i32_0 = arith.constant 0 : i32
    return %arg0, %c0_i32 : i32, i32
  }
}

</mosaic_0001>

<bundles_post_ra>
// kernel: tpu_custom_call.1
= control target key start
LH: loop header
LB: loop body
LE: loop exit
PB: predicated region body
PF: predicated region fallthrough
CT: control target
= control target key end

     0   :  { %8 = vsyncpa [#allocation3], 0  ;;  %s219_s0 = inlined_call_operand.hbm [shape: f32[8,32], index: 0, kind: input, shape index: {}]   ;;  %s220_s1 = inlined_call_operand.hbm [shape: f32[32,128], index: 1, kind: input, shape index: {}]   ;;  %s221_s2 = inlined_call_operand.vmem [shape: f32[1,128], index: 2, kind: input, shape index: {}]   ;;  %s222_s3 = inlined_call_operand.hbm [shape: f32[8,128], index: 3, kind: output, shape index: {}]  }
   0x1   :  { %9 = vsyncpa [#allocation6], 0 }
   0x2   :  { %10 = vsyncpa [#allocation4], 0  ;;  %s16_s14 = sshll.u32 %s219_s0, 4  ;;  %s182_s15 = smov [#allocation2]   ;;  %s17_s14 = int_to_ptr.hbm [resolvable:$true] %s16_s14 }
   0x3   :  { %s18_s16 = sshll.u32 %s182_s15, 4  ;;  %s26_s19 = sshll.u32 %s220_s1, 4  ;;  %s19_s16 = int_to_ptr.vmem [resolvable:$true] %s18_s16  ;;  %s27_s19 = int_to_ptr.hbm [resolvable:$true] %s26_s19 }
   0x4   :  { %21 = dma.hbm_to_vmem [thread:$0]  %s17_s14, 128, %s19_s16, [#allocation3]  }
   0x5   :  { %s183_s20 = smov [#allocation5]   ;;  %s184_s22 = smov 128  }
   0x6   :  { %s28_s21 = sshll.u32 %s183_s20, 4  ;;  %s185_s23 = smov 8   ;;  %s29_s21 = int_to_ptr.vmem [resolvable:$true] %s28_s21 }
   0x7   :  { %34 = dma.hbm_to_vmem [thread:$0]  %s27_s19, 512, %s29_s21, [#allocation6], %s184_s22, %s184_s22, %s185_s23  }
   0x8   :  { %176 = dma.done.wait [#allocation3], 128  }
   0x9   :  { %177 = vsyncadd [#allocation3], 4294967168 }
   0xa   :  { %178 = dma.done.wait [#allocation6], 512  }
   0xb   :  { %179 = vsyncadd [#allocation6], 4294966784  ;;  %v49_v0 = vld [vmem:[#allocation5 + $0x18] sm:$0xff]  ;;  %v48_v1 = vld [vmem:[#allocation5 + $0x10] sm:$0xff]  ;;  %vm54_vm0 = vcmask 261120   ;;  %s186_s24 = smov [#allocation7]  }
   0xc   :  { %70 = vmatpush.msra.mxu0 %v49_v0  ;;  %v47_v2 = vld [vmem:[#allocation5 + $0x8] sm:$0xff]  ;;  %v46_v3 = vld [vmem:[#allocation5] sm:$0xff]  ;;  %v45_v4 = vld [vmem:[#allocation2] sm:$0xff]  ;;  %s84_s25 = sshll.u32 %s186_s24, 4  ;;  %s86_s28 = sshll.u32 %s222_s3, 4  ;;  %s85_s25 = int_to_ptr.vmem [resolvable:$true] %s84_s25  ;;  %s87_s28 = int_to_ptr.hbm [resolvable:$true] %s86_s28 }
   0xd   :  { %v103_v5 = vld [vmem:[%s221_s2] ss:$0 sm:$0xff] }
   0xe   :  { %71 = vmatpush.msra.mxu0 %v48_v1 }
  0x10   :  { %72 = vmatpush.msra.mxu0 %v47_v2 }
  0x12   :  { %73 = vmatpush.msra.mxu0 %v46_v3 }
  0x13   :  { %97 = vmatmul.msk.f32.vlgmr.msra.gmra.mxu0 %vm54_vm0, %v45_v4 }
  0x90   :  { %v75_v6 = vpop.f32.mrf.mxu0 }
  0x91   :  { %v76_v7 = vadd.f32 %v103_v5, %v75_v6 }
  0x93   :  { %78 = vst [vmem:[#allocation7] sm:$0xff] %v76_v7 }
  0x94   :  { %89 = dma.vmem_to_hbm [thread:$0]  %s85_s25, 128, %s87_s28, [#allocation4]  }
  0x95   :  { %180 = dma.done.wait [#allocation4], 128  }
  0x96   :  { %181 = vsyncadd [#allocation4], 4294967168 }
  0x97   :  { %94 = vsyncpa [#allocation3], 1 }
  0x98   :  { %95 = vsyncpa [#allocation6], 1 }
  0x99   :  { %96 = vsyncpa [#allocation4], 1 }

</bundles_post_ra>
